<compile_context>
chip_gen: v5e
topology: v5e:2x2
jax: 0.10.0
libtpu: 0.0.40
codegen_flags: <defaults>
</compile_context>

<pallas_src>
import functools
import math

import jax
import jax.numpy as jnp
from jax import lax
from jax.experimental import pallas as pl
from jax.experimental.pallas import tpu as pltpu


# ----------------------- kernel 1: fused QKV + RoPE -------------------------
def _qkv_rope_kernel(x_ref, w_ref, cos_ref, sin_ref, q_ref, k_ref, v_ref, *,
                     dk, scale, use_roll):
    """Per (batch, seq-tile, head): one fused QKV matmul + rotate-half RoPE.

    w_ref stacks [wq_h ; wk_h ; wv_h] along sublanes (3*dk, D); wq/wk rows were
    pre-permuted (even features first) in the wrapper so interleaved-pair RoPE
    becomes rotate-half.  cos/sin are (ts, dk) with the first-half sign folded
    into sin.
    """
    x = x_ref[...]                                    # (ts, D)    bf16
    w = w_ref[...]                                    # (3*dk, D)  bf16
    # One MXU pass with N = 3*dk instead of three skinny N = dk passes.
    r = lax.dot_general(x, w, (((1,), (1,)), ((), ())),
                        preferred_element_type=jnp.float32)   # (ts, 3*dk) f32
    q = r[:, :dk]
    k = r[:, dk:2 * dk]
    v = r[:, 2 * dk:]

    cos = cos_ref[...]                                # (ts, dk) f32
    sin = sin_ref[...]                                # (ts, dk) f32 (1st half negated)
    hd = dk // 2

    def rope(t):
        if use_roll:                                  # XLU lane rotate (free slot)
            rot = pltpu.roll(t, shift=hd, axis=1)
        else:                                         # safe fallback for tiny dk
            rot = jnp.concatenate([t[:, hd:], t[:, :hd]], axis=-1)
        return t * cos + rot * sin

    q_ref[...] = (rope(q) * scale).astype(q_ref.dtype)   # 1/sqrt(dk) folded into Q
    k_ref[...] = rope(k).astype(k_ref.dtype)
    v_ref[...] = v.astype(v_ref.dtype)


# -------------- kernel 2: causal flash attention (flattened grid) -----------
def _flash_attn_kernel(qi_tab, ki_tab, q_ref, k_ref, v_ref, o_ref,
                       m_sc, l_sc, acc_sc, *, tq, tk):
    t = pl.program_id(2)
    qi = qi_tab[t]                                    # SMEM scalar lookups
    ki = ki_tab[t]
    ki_last = (qi * tq + tq - 1) // tk                # last kv tile in the band

    @pl.when(ki == 0)
    def _():                                          # new (b, h, q-tile)
        m_sc[...] = jnp.full(m_sc.shape, -jnp.inf, dtype=m_sc.dtype)
        l_sc[...] = jnp.zeros_like(l_sc)
        acc_sc[...] = jnp.zeros_like(acc_sc)

    def update(apply_mask):
        s = lax.dot_general(q_ref[...], k_ref[...], (((1,), (1,)), ((), ())),
                            preferred_element_type=jnp.float32)      # (tq, tk)
        if apply_mask:                                # only diagonal-crossing tiles
            row = qi * tq + lax.broadcasted_iota(jnp.int32, s.shape, 0)
            col = ki * tk + lax.broadcasted_iota(jnp.int32, s.shape, 1)
            s = jnp.where(row >= col, s, -jnp.inf)
        m_prev = m_sc[...]
        m_new = jnp.maximum(m_prev, jnp.max(s, axis=-1, keepdims=True))
        alpha = jnp.exp(m_prev - m_new)
        p = jnp.exp(s - m_new)
        l_sc[...] = alpha * l_sc[...] + jnp.sum(p, axis=-1, keepdims=True)
        acc_sc[...] = alpha * acc_sc[...] + lax.dot_general(
            p.astype(v_ref.dtype), v_ref[...], (((1,), (0,)), ((), ())),
            preferred_element_type=jnp.float32)
        m_sc[...] = m_new

    crosses_diag = (ki + 1) * tk - 1 > qi * tq        # tile touches the diagonal

    @pl.when(crosses_diag)
    def _():
        update(apply_mask=True)

    @pl.when(jnp.logical_not(crosses_diag))
    def _():
        update(apply_mask=False)

    @pl.when(ki == ki_last)                           # finalize this (b, h, q-tile)
    def _():
        o_ref[...] = (acc_sc[...] *
                      pl.reciprocal(l_sc[...], approx=True)).astype(o_ref.dtype)


# ------------- kernel 3: output projection (reduce over heads) --------------
def _out_proj_kernel(attn_ref, w_ref, o_ref, acc_ref):
    h = pl.program_id(3)

    @pl.when(h == 0)
    def _():
        acc_ref[...] = jnp.zeros_like(acc_ref)

    acc_ref[...] += lax.dot_general(attn_ref[...], w_ref[...],
                                    (((1,), (0,)), ((), ())),
                                    preferred_element_type=jnp.float32)

    @pl.when(h == pl.num_programs(3) - 1)
    def _():
        o_ref[...] = acc_ref[...].astype(o_ref.dtype)


# --------------------------------- wrapper ----------------------------------
def _pick_tile(n, target):
    """Use `target` if it evenly tiles `n`, else fall back to the full dim."""
    return target if (target <= n and n % target == 0) else n


def multihead_self_attention(x, wq, wk, wv, wo, *, num_heads, theta=10000.0,
                             q_tile=256, kv_tile=256, qkv_seq_tile=1024,
                             proj_m_tile=1024, proj_n_tile=512,
                             compute_dtype=jnp.bfloat16,
                             vmem_limit_bytes=64 * 1024 * 1024):
    B, S, D = x.shape
    assert D % num_heads == 0
    dk = D // num_heads
    assert dk % 2 == 0

    tq = _pick_tile(S, q_tile)
    tk = _pick_tile(S, kv_tile)
    ts = _pick_tile(S, qkv_seq_tile)      # decoupled from tq (weight DMA ~ 1/ts)

    # RoPE tables in half-split (rotate-half) layout; sign folded into sin.
    inv_freq = 1.0 / theta ** (jnp.arange(0, dk, 2, dtype=jnp.float32) / dk)
    angles = jnp.arange(S, dtype=jnp.float32)[:, None] * inv_freq[None, :]
    cos2 = jnp.concatenate([jnp.cos(angles), jnp.cos(angles)], axis=-1)   # (S, dk)
    sin2 = jnp.concatenate([-jnp.sin(angles), jnp.sin(angles)], axis=-1)  # (S, dk)

    # Permute wq/wk rows (even features first) so the kernel uses rotate-half
    # RoPE; q.k dot products are permutation-invariant, so attention output is
    # identical to the interleaved formulation.
    perm = jnp.concatenate([jnp.arange(0, dk, 2), jnp.arange(1, dk, 2)])
    wq_h = wq.reshape(num_heads, dk, D)[:, perm, :]
    wk_h = wk.reshape(num_heads, dk, D)[:, perm, :]
    wv_h = wv.reshape(num_heads, dk, D)
    w_heads = jnp.concatenate([wq_h, wk_h, wv_h], axis=1).astype(compute_dtype)

    # W_o per head, transposed: out = sum_h attn_h @ woT_h[h].
    woT_h = wo.reshape(D, num_heads, dk).transpose(1, 2, 0).astype(compute_dtype)

    x_c = x.astype(compute_dtype)
    scale = 1.0 / math.sqrt(dk)

    def cparams(sem):
        return pltpu.CompilerParams(dimension_semantics=sem,
                                    vmem_limit_bytes=vmem_limit_bytes)

    # ---- kernel 1: QKV projection + RoPE -> head-major (B, H, S, dk) ----
    qkv_shape = jax.ShapeDtypeStruct((B, num_heads, S, dk), compute_dtype)
    qkv_out_spec = pl.BlockSpec((None, None, ts, dk),
                                lambda b, si, h: (b, h, si, 0))
    q, k, v = pl.pallas_call(
        functools.partial(_qkv_rope_kernel, dk=dk, scale=scale,
                          use_roll=(dk % 128 == 0)),
        out_shape=(qkv_shape, qkv_shape, qkv_shape),
        grid_spec=pltpu.PrefetchScalarGridSpec(
            num_scalar_prefetch=0,
            grid=(B, S // ts, num_heads),          # heads innermost: x fetched once
            in_specs=[
                pl.BlockSpec((None, ts, D), lambda b, si, h: (b, si, 0)),
                pl.BlockSpec((None, 3 * dk, D), lambda b, si, h: (h, 0, 0)),
                pl.BlockSpec((ts, dk), lambda b, si, h: (si, 0)),
                pl.BlockSpec((ts, dk), lambda b, si, h: (si, 0)),
            ],
            out_specs=[qkv_out_spec, qkv_out_spec, qkv_out_spec],
        ),
        compiler_params=cparams(("parallel", "parallel", "parallel")),
    )(x_c, w_heads, cos2, sin2)

    # ---- flattened causal (qi, ki) schedule: no dead grid steps ----
    nq = S // tq
    qi_list, ki_list = [], []
    for qi in range(nq):
        for ki in range((qi * tq + tq - 1) // tk + 1):
            qi_list.append(qi)
            ki_list.append(ki)
    qi_tab = jnp.asarray(qi_list, dtype=jnp.int32)
    ki_tab = jnp.asarray(ki_list, dtype=jnp.int32)
    n_steps = len(qi_list)

    # ---- kernel 2: causal flash attention -> head-major attn (B, H, S, dk) ----
    attn = pl.pallas_call(
        functools.partial(_flash_attn_kernel, tq=tq, tk=tk),
        out_shape=jax.ShapeDtypeStruct((B, num_heads, S, dk), compute_dtype),
        grid_spec=pltpu.PrefetchScalarGridSpec(
            num_scalar_prefetch=2,
            grid=(B, num_heads, n_steps),
            in_specs=[
                pl.BlockSpec((None, None, tq, dk),
                             lambda b, h, t, qt, kt: (b, h, qt[t], 0)),
                pl.BlockSpec((None, None, tk, dk),
                             lambda b, h, t, qt, kt: (b, h, kt[t], 0)),
                pl.BlockSpec((None, None, tk, dk),
                             lambda b, h, t, qt, kt: (b, h, kt[t], 0)),
            ],
            out_specs=pl.BlockSpec((None, None, tq, dk),
                                   lambda b, h, t, qt, kt: (b, h, qt[t], 0)),
            scratch_shapes=[
                pltpu.VMEM((tq, 1), jnp.float32),    # m: running max
                pltpu.VMEM((tq, 1), jnp.float32),    # l: running denominator
                pltpu.VMEM((tq, dk), jnp.float32),   # per-head accumulator
            ],
        ),
        compiler_params=cparams(("parallel", "parallel", "arbitrary")),
    )(qi_tab, ki_tab, q, k, v)

    # ---- kernel 3: output projection, reducing over the head axis ----
    tm = _pick_tile(S, proj_m_tile)
    tn = _pick_tile(D, proj_n_tile)
    out = pl.pallas_call(
        _out_proj_kernel,
        out_shape=jax.ShapeDtypeStruct((B, S, D), x.dtype),
        grid_spec=pltpu.PrefetchScalarGridSpec(
            num_scalar_prefetch=0,
            grid=(B, S // tm, D // tn, num_heads),
            in_specs=[
                pl.BlockSpec((None, None, tm, dk),
                             lambda b, si, nj, h: (b, h, si, 0)),
                pl.BlockSpec((None, dk, tn), lambda b, si, nj, h: (h, 0, nj)),
            ],
            out_specs=pl.BlockSpec((None, tm, tn),
                                   lambda b, si, nj, h: (b, si, nj)),
            scratch_shapes=[pltpu.VMEM((tm, tn), jnp.float32)],
        ),
        compiler_params=cparams(("parallel", "parallel", "parallel", "arbitrary")),
    )(attn, woT_h)
    return out


# ----------------------------- pure-JAX reference ---------------------------
def _reference(x, wq, wk, wv, wo, *, num_heads, theta=10000.0):
    B, S, D = x.shape
    dk = D // num_heads
    q = jnp.einsum('bsd,od->bso', x, wq)
    k = jnp.einsum('bsd,od->bso', x, wk)
    v = jnp.einsum('bsd,od->bso', x, wv)
    split = lambda t: t.reshape(B, S, num_heads, dk).transpose(0, 2, 1, 3)
    q, k, v = split(q), split(k), split(v)

    inv_freq = 1.0 / theta ** (jnp.arange(0, dk, 2, dtype=jnp.float32) / dk)
    angles = jnp.arange(S, dtype=jnp.float32)[:, None] * inv_freq[None, :]
    cos, sin = jnp.cos(angles), jnp.sin(angles)            # (S, dk//2)

    def rope(t):
        x1, x2 = t[..., 0::2], t[..., 1::2]
        out = jnp.stack([x1 * cos - x2 * sin, x1 * sin + x2 * cos], axis=-1)
        return out.reshape(t.shape)

    q, k = rope(q), rope(k)
    s = jnp.einsum('bhqd,bhkd->bhqk', q, k) / jnp.sqrt(jnp.float32(dk))
    mask = jnp.tril(jnp.ones((S, S), bool))
    s = jnp.where(mask, s, -jnp.inf)
    s = s - jnp.max(s, axis=-1, keepdims=True)
    p = jnp.exp(s)
    a = p / jnp.sum(p, axis=-1, keepdims=True)
    o = jnp.einsum('bhqk,bhkd->bhqd', a, v)
    o = o.transpose(0, 2, 1, 3).reshape(B, S, D)
    return jnp.einsum('bsd,od->bso', o, wo)


if __name__ == "__main__":
    def run_case(B, S, D, H, rtol, atol, **kw):
        key = jax.random.PRNGKey(0)
        kx, kq, kk, kv, ko = jax.random.split(key, 5)
        sigma = math.sqrt(2.0 / (D + D))
        init_w = lambda k: (sigma * jax.random.truncated_normal(
            k, -3.0, 3.0, (D, D), jnp.float32))
        wq, wk, wv, wo = init_w(kq), init_w(kk), init_w(kv), init_w(ko)
        x = jax.random.normal(kx, (B, S, D), jnp.float32)

        out = multihead_self_attention(x, wq, wk, wv, wo, num_heads=H, **kw)
        out = jax.block_until_ready(out)
        ref = _reference(x, wq, wk, wv, wo, num_heads=H)
        assert out.shape == (B, S, D)
        err = jnp.max(jnp.abs(out - ref))
        assert jnp.allclose(out, ref, rtol=rtol, atol=atol), \
            f"max abs err = {err} (B={B}, S={S}, D={D}, H={H})"

    # Small smoke test (single tile everywhere; concat RoPE fallback, dk=8).
    run_case(B=2, S=8, D=32, H=4, rtol=3e-2, atol=3e-2)

    # Multi-tile causal test: exercises the flattened (qi, ki) schedule with
    # tq != tk, diagonal-only masking, the pltpu.roll RoPE path (dk=128), and
    # the decoupled QKV seq tile.
    run_case(B=2, S=512, D=256, H=2, rtol=5e-2, atol=5e-2,
             q_tile=128, kv_tile=64, qkv_seq_tile=256)

    print("KERNEL_OK")
</pallas_src>

<mosaic_0001>
module attributes {stable_mosaic.version = 11 : i64} {
  func.func @_qkv_rope_kernel(%arg0: i32, %arg1: i32, %arg2: i32, %arg3: memref<1x8x32xbf16, #tpu.memory_space<vmem>>, %arg4: memref<1x24x32xbf16, #tpu.memory_space<vmem>>, %arg5: memref<8x8xf32, #tpu.memory_space<vmem>>, %arg6: memref<8x8xf32, #tpu.memory_space<vmem>>, %arg7: memref<1x1x8x8xbf16, #tpu.memory_space<vmem>>, %arg8: memref<1x1x8x8xbf16, #tpu.memory_space<vmem>>, %arg9: memref<1x1x8x8xbf16, #tpu.memory_space<vmem>>) attributes {dimension_semantics = [#tpu.dimension_semantics<parallel>, #tpu.dimension_semantics<parallel>, #tpu.dimension_semantics<parallel>], iteration_bounds = array<i64: 2, 1, 4>, scalar_prefetch = 0 : i64, scratch_operands = 0 : i64, tpu.core_type = #tpu.core_type<tc>, window_params = [{transform_indices = @transform_0, window_bounds = array<i64: 1, 8, 32>}, {transform_indices = @transform_1, window_bounds = array<i64: 1, 24, 32>}, {transform_indices = @transform_2, window_bounds = array<i64: 8, 8>}, {transform_indices = @transform_3, window_bounds = array<i64: 8, 8>}, {transform_indices = @transform_4, window_bounds = array<i64: 1, 1, 8, 8>}, {transform_indices = @transform_5, window_bounds = array<i64: 1, 1, 8, 8>}, {transform_indices = @transform_6, window_bounds = array<i64: 1, 1, 8, 8>}]} {
    %c0 = arith.constant 0 : index
    %c0_0 = arith.constant 0 : index
    %c0_1 = arith.constant 0 : index
    %0 = vector.load %arg3[%c0, %c0_0, %c0_1] : memref<1x8x32xbf16, #tpu.memory_space<vmem>>, vector<1x8x32xbf16>
    %1 = vector.shape_cast %0 : vector<1x8x32xbf16> to vector<8x32xbf16>
    %c0_2 = arith.constant 0 : index
    %c0_3 = arith.constant 0 : index
    %c0_4 = arith.constant 0 : index
    %2 = vector.load %arg4[%c0_2, %c0_3, %c0_4] : memref<1x24x32xbf16, #tpu.memory_space<vmem>>, vector<1x24x32xbf16>
    %3 = vector.shape_cast %2 : vector<1x24x32xbf16> to vector<24x32xbf16>
    %cst = arith.constant dense<0.000000e+00> : vector<8x24xf32>
    %4 = tpu.matmul %1, %3, %cst {dimension_numbers = #tpu.dot_dimension_numbers<[1], [1], [0], [0], [0, 0, 1, 0], [], []>} : vector<8x32xbf16>, vector<24x32xbf16>, vector<8x24xf32> -> vector<8x24xf32>
    %5 = vector.extract_strided_slice %4 {offsets = [0, 0], sizes = [8, 8], strides = [1, 1]} : vector<8x24xf32> to vector<8x8xf32>
    %6 = vector.extract_strided_slice %4 {offsets = [0, 8], sizes = [8, 8], strides = [1, 1]} : vector<8x24xf32> to vector<8x8xf32>
    %7 = vector.extract_strided_slice %4 {offsets = [0, 16], sizes = [8, 8], strides = [1, 1]} : vector<8x24xf32> to vector<8x8xf32>
    %c0_5 = arith.constant 0 : index
    %c0_6 = arith.constant 0 : index
    %8 = vector.load %arg5[%c0_5, %c0_6] : memref<8x8xf32, #tpu.memory_space<vmem>>, vector<8x8xf32>
    %c0_7 = arith.constant 0 : index
    %c0_8 = arith.constant 0 : index
    %9 = vector.load %arg6[%c0_7, %c0_8] : memref<8x8xf32, #tpu.memory_space<vmem>>, vector<8x8xf32>
    %10 = vector.extract_strided_slice %5 {offsets = [0, 4], sizes = [8, 4], strides = [1, 1]} : vector<8x8xf32> to vector<8x4xf32>
    %11 = vector.extract_strided_slice %5 {offsets = [0, 0], sizes = [8, 4], strides = [1, 1]} : vector<8x8xf32> to vector<8x4xf32>
    %12 = tpu.concatenate %10, %11 in 1 : vector<8x4xf32>, vector<8x4xf32> -> vector<8x8xf32>
    %13 = arith.mulf %5, %8 : vector<8x8xf32>
    %14 = arith.mulf %12, %9 : vector<8x8xf32>
    %15 = arith.addf %13, %14 : vector<8x8xf32>
    %cst_9 = arith.constant 0.353553385 : f32
    %16 = vector.broadcast %cst_9 : f32 to vector<8x8xf32>
    %17 = arith.mulf %15, %16 : vector<8x8xf32>
    %18 = arith.truncf %17 : vector<8x8xf32> to vector<8x8xbf16>
    %c0_10 = arith.constant 0 : index
    %c0_11 = arith.constant 0 : index
    %c0_12 = arith.constant 0 : index
    %c0_13 = arith.constant 0 : index
    %19 = vector.load %arg7[%c0_10, %c0_11, %c0_12, %c0_13] : memref<1x1x8x8xbf16, #tpu.memory_space<vmem>>, vector<1x1x8x8xbf16>
    %20 = vector.shape_cast %19 : vector<1x1x8x8xbf16> to vector<8x8xbf16>
    %21 = vector.shape_cast %18 : vector<8x8xbf16> to vector<1x1x8x8xbf16>
    tpu.vector_store %arg7[%c0_10, %c0_11, %c0_12, %c0_13], %21 {strides = array<i32>} : memref<1x1x8x8xbf16, #tpu.memory_space<vmem>>, vector<1x1x8x8xbf16>,
    %22 = vector.extract_strided_slice %6 {offsets = [0, 4], sizes = [8, 4], strides = [1, 1]} : vector<8x8xf32> to vector<8x4xf32>
    %23 = vector.extract_strided_slice %6 {offsets = [0, 0], sizes = [8, 4], strides = [1, 1]} : vector<8x8xf32> to vector<8x4xf32>
    %24 = tpu.concatenate %22, %23 in 1 : vector<8x4xf32>, vector<8x4xf32> -> vector<8x8xf32>
    %25 = arith.mulf %6, %8 : vector<8x8xf32>
    %26 = arith.mulf %24, %9 : vector<8x8xf32>
    %27 = arith.addf %25, %26 : vector<8x8xf32>
    %28 = arith.truncf %27 : vector<8x8xf32> to vector<8x8xbf16>
    %c0_14 = arith.constant 0 : index
    %c0_15 = arith.constant 0 : index
    %c0_16 = arith.constant 0 : index
    %c0_17 = arith.constant 0 : index
    %29 = vector.load %arg8[%c0_14, %c0_15, %c0_16, %c0_17] : memref<1x1x8x8xbf16, #tpu.memory_space<vmem>>, vector<1x1x8x8xbf16>
    %30 = vector.shape_cast %29 : vector<1x1x8x8xbf16> to vector<8x8xbf16>
    %31 = vector.shape_cast %28 : vector<8x8xbf16> to vector<1x1x8x8xbf16>
    tpu.vector_store %arg8[%c0_14, %c0_15, %c0_16, %c0_17], %31 {strides = array<i32>} : memref<1x1x8x8xbf16, #tpu.memory_space<vmem>>, vector<1x1x8x8xbf16>,
    %32 = arith.truncf %7 : vector<8x8xf32> to vector<8x8xbf16>
    %c0_18 = arith.constant 0 : index
    %c0_19 = arith.constant 0 : index
    %c0_20 = arith.constant 0 : index
    %c0_21 = arith.constant 0 : index
    %33 = vector.load %arg9[%c0_18, %c0_19, %c0_20, %c0_21] : memref<1x1x8x8xbf16, #tpu.memory_space<vmem>>, vector<1x1x8x8xbf16>
    %34 = vector.shape_cast %33 : vector<1x1x8x8xbf16> to vector<8x8xbf16>
    %35 = vector.shape_cast %32 : vector<8x8xbf16> to vector<1x1x8x8xbf16>
    tpu.vector_store %arg9[%c0_18, %c0_19, %c0_20, %c0_21], %35 {strides = array<i32>} : memref<1x1x8x8xbf16, #tpu.memory_space<vmem>>, vector<1x1x8x8xbf16>,
    return
  }
  func.func @transform_0(%arg0: i32, %arg1: i32, %arg2: i32) -> (i32, i32, i32) {
    %c0_i32 = arith.constant 0 : i32
    %c0_i32_0 = arith.constant 0 : i32
    return %arg0, %arg1, %c0_i32 : i32, i32, i32
  }
  func.func @transform_1(%arg0: i32, %arg1: i32, %arg2: i32) -> (i32, i32, i32) {
    %c0_i32 = arith.constant 0 : i32
    %c0_i32_0 = arith.constant 0 : i32
    %c0_i32_1 = arith.constant 0 : i32
    return %arg2, %c0_i32, %c0_i32_0 : i32, i32, i32
  }
  func.func @transform_2(%arg0: i32, %arg1: i32, %arg2: i32) -> (i32, i32) {
    %c0_i32 = arith.constant 0 : i32
    %c0_i32_0 = arith.constant 0 : i32
    return %arg1, %c0_i32 : i32, i32
  }
  func.func @transform_3(%arg0: i32, %arg1: i32, %arg2: i32) -> (i32, i32) {
    %c0_i32 = arith.constant 0 : i32
    %c0_i32_0 = arith.constant 0 : i32
    return %arg1, %c0_i32 : i32, i32
  }
  func.func @transform_4(%arg0: i32, %arg1: i32, %arg2: i32) -> (i32, i32, i32, i32) {
    %c0_i32 = arith.constant 0 : i32
    %c0_i32_0 = arith.constant 0 : i32
    return %arg0, %arg2, %arg1, %c0_i32 : i32, i32, i32, i32
  }
  func.func @transform_5(%arg0: i32, %arg1: i32, %arg2: i32) -> (i32, i32, i32, i32) {
    %c0_i32 = arith.constant 0 : i32
    %c0_i32_0 = arith.constant 0 : i32
    return %arg0, %arg2, %arg1, %c0_i32 : i32, i32, i32, i32
  }
  func.func @transform_6(%arg0: i32, %arg1: i32, %arg2: i32) -> (i32, i32, i32, i32) {
    %c0_i32 = arith.constant 0 : i32
    %c0_i32_0 = arith.constant 0 : i32
    return %arg0, %arg2, %arg1, %c0_i32 : i32, i32, i32, i32
  }
}

</mosaic_0001>

<bundles_post_ra>
// kernel: tpu_custom_call.1
= control target key start
LH: loop header
LB: loop body
LE: loop exit
PB: predicated region body
PF: predicated region fallthrough
CT: control target
= control target key end

     0   :  { %s1677_s0 = inlined_call_operand.hbm [shape: bf16[2,8,32], index: 0, kind: input, shape index: {}]   ;;  %s1678_s1 = inlined_call_operand.hbm [shape: bf16[4,24,32], index: 1, kind: input, shape index: {}]   ;;  %s1679_s2 = inlined_call_operand.hbm [shape: f32[8,8], index: 2, kind: input, shape index: {}]   ;;  %s1680_s3 = inlined_call_operand.hbm [shape: f32[8,8], index: 3, kind: input, shape index: {}]   ;;  %s1681_s4 = inlined_call_operand.hbm [shape: bf16[2,4,8,8], index: 4, kind: output, shape index: {0}]   ;;  %s1682_s5 = inlined_call_operand.hbm [shape: bf16[2,4,8,8], index: 5, kind: output, shape index: {1}]   ;;  %s1683_s6 = inlined_call_operand.hbm [shape: bf16[2,4,8,8], index: 6, kind: output, shape index: {2}]  }
   0x1   :  { %1697 = sst [smem:[#allocation31_spill]] %s1677_s0 }
   0x2   :  { %1698 = sst [smem:[#allocation32_spill]] %s1679_s2 }
   0x3   :  { %1699 = sst [smem:[#allocation33_spill]] %s1680_s3 }
   0x4   :  { %1700 = sst [smem:[#allocation34_spill]] %s1681_s4 }
   0x5   :  { %1701 = sst [smem:[#allocation35_spill]] %s1682_s5 }
   0x6   :  { %1702 = sst [smem:[#allocation36_spill]] %s1683_s6 }
   0x7   :  { %12 = vsyncpa [#allocation3], 0 }
   0x8   :  { %14 = vsyncpa [#allocation3 + $0x1], 0 }
   0x9   :  { %15 = vsyncpa [#allocation6], 0 }
   0xa   :  { %17 = vsyncpa [#allocation6 + $0x1], 0 }
   0xb   :  { %18 = vsyncpa [#allocation9], 0 }
   0xc   :  { %19 = vsyncpa [#allocation4], 0 }
   0xd   :  { %21 = vsyncpa [#allocation4 + $0x1], 0 }
   0xe   :  { %22 = vsyncpa [#allocation12], 0 }
   0xf   :  { %24 = vsyncpa [#allocation12 + $0x1], 0  ;;  %s1344_s21 = smov 0   ;;  %s1346_s22 = smov 0  }
  0x10   :  { %s1348_s23 = smov 0   ;;  %s1350_s24 = smov 0  }
  0x11   :  { %s1352_s25 = smov 0   ;;  %s1354_s26 = smov 0  }
  0x12   :  { %s1356_s27 = smov 0   ;;  %s1358_s28 = smov 0  }
  0x13   :  { %s1360_s29 = smov 0   ;;  %s1362_s30 = smov 0  }
  0x14   :  { %s1364_s7 = smov 0   ;;  %s1366_s8 = smov 0  }
  0x15   :  { %s1368_s9 = smov 0   ;;  %s1370_s10 = smov 0  }
  0x16 LB: > { %1703 = sst [smem:[#allocation20_spill]] %s1245_s21  ;;  %s1413_s11 = sadd.s32 4294967295, %s1297_s10   ;;  %s1297_s10 = sphi %s1370_s10, %s30_s10   ;;  %s1293_s9 = sphi %s1368_s9, %s1740_s9   ;;  %s1289_s8 = sphi %s1366_s8, %s1749_s8   ;;  %s1285_s7 = sphi %s1364_s7, %s1738_s7   ;;  %s1281_s30 = sphi %s1362_s30, %s1748_s30   ;;  %s1277_s29 = sphi %s1360_s29, %s1737_s29   ;;  %s1273_s28 = sphi %s1358_s28, %s1747_s28   ;;  %s1269_s27 = sphi %s1356_s27, %s1746_s27   ;;  %s1265_s26 = sphi %s1354_s26, %s1745_s26   ;;  %s1261_s25 = sphi %s1352_s25, %s1744_s25   ;;  %s1257_s24 = sphi %s1350_s24, %s1743_s24   ;;  %s1253_s23 = sphi %s1348_s23, %s1734_s23   ;;  %s1249_s22 = sphi %s1346_s22, %s1742_s22   ;;  %s1245_s21 = sphi %s1344_s21, %s1741_s21  }
  0x17   : > { %1704 = sst [smem:[#allocation21_spill]] %s1253_s23  ;;  %s1684_s12 = sadd.s32 4294967294, %s1297_s10  }
  0x18   : > { %1705 = sst [smem:[#allocation22_spill]] %s1277_s29  ;;  %p72_p0 = scmp.eq.s32.totalorder %s1413_s11, 0 }
  0x19   : > { %1706 = sst [smem:[#allocation23_spill]] %s1293_s9  ;;  %p97_p1 = scmp.ne.s32.totalorder %s1261_s25, %s1257_s24 }
  0x1a   : > { %p176_p2 = scmp.ne.s32.totalorder %s1253_s23, %s1249_s22  ;;  %p177_p3 = scmp.eq.s32.totalorder %s1413_s11, 7 }
  0x1b   : > { %p1423_p4 = por %p97_p1, %p72_p0  ;;  %p182_p5 = scmp.ne.s32.totalorder %s1249_s22, %s1245_s21 }
  0x1c   : > { %p1429_p6 = por %p177_p3, %p176_p2  ;;  %p183_p7 = scmp.eq.s32.totalorder %s1684_s12, 7 }
  0x1d   : > { %p755_p8 = scmp.ge.s32.totalorder %s1297_s10, 1  ;;  %p250_p9 = scmp.lt.s32.totalorder %s1297_s10, 9 }
  0x1e   : > { %s1708_s14 = scalar_select %p1429_p6, 1, 0 }
  0x1f   : > { %p1437_p10 = por %p183_p7, %p182_p5  ;;  %p1441_p11 = pnand %p755_p8, %p250_p9 }
  0x20   : > { %1709 = sst [smem:[#allocation24_spill]] %s1708_s14  ;;  %s1299_s20 = smov [#allocation7]  }
  0x21   : > { %s1710_s15 = scalar_select %p1437_p10, 1, 0 }
  0x22   : > { %s1713_s2 = sld [smem:[#allocation32_spill]]  ;;  %p807_p12 = pneg %p1441_p11 }
  0x23   : > { %1711 = sst [smem:[#allocation25_spill]] %s1710_s15  ;;  %s266_s24 = sshll.u32 %s1299_s20, 4  ;;  %s267_s24 = int_to_ptr.vmem [resolvable:$true] %s266_s24 }
  0x24   : > { %p808_p13 = pnand %p807_p12, %p72_p0  ;;  %s1714_s3 = sld [smem:[#allocation33_spill]] }
  0x25   : > { %s1300_s18 = smov [#allocation8]   ;;  %s42_s20 = sadd.s32 1, %s1289_s8 }
  0x26   : > { %p43_p1 = scmp.ge.s32.totalorder %s42_s20, 4  ;;  %s49_s21 = sadd.s32 1, %s1293_s9 }
  0x27   : > { %s58_s12 = sadd.s32 1, %s1277_s29  ;;  %p65_p2 = scmp.ne.s32.totalorder %s1277_s29, %s1273_s28 }
  0x28   : > { %s264_s19 = sshll.u32 %s1713_s2, 4  ;;  %s280_s2 = sshll.u32 %s1300_s18, 4  ;;  %s265_s19 = int_to_ptr.hbm [resolvable:$true] %s264_s19  ;;  %s281_s2 = int_to_ptr.vmem [resolvable:$true] %s280_s2 }
  0x29   : > { %810 = dma.hbm_to_vmem [thread:$0]  (!%p808_p13), %s265_s19, 128, %s267_s24, [#allocation6]  }
  0x2a   : > { %s278_s17 = sshll.u32 %s1714_s3, 4  ;;  %s1751_s20 = smov (%p43_p1, %s42_s20), 0  ;;  %s279_s17 = int_to_ptr.hbm [resolvable:$true] %s278_s17 }
  0x2b   : > { %813 = dma.hbm_to_vmem [thread:$0]  (!%p808_p13), %s279_s17, 128, %s281_s2, [#allocation9]  }
  0x2c   : > { %1715 = sst [smem:[#allocation26_spill]] %s1751_s20  ;;  %s1753_s21 = smov (!%p43_p1, %s49_s21), %s1293_s9 }
  0x2d   : > { %p66_p3 = scmp.eq.s32.totalorder %s1297_s10, 0  ;;  %p71_p5 = scmp.ne.s32.totalorder %s1273_s28, %s1269_s27 }
  0x2e   : > { %p51_p7 = scmp.ge.s32.totalorder %s1753_s21, 2  ;;  %s81_s2 = ssub.s32 %s1289_s8, %s1751_s20 }
  0x2f   : > { %p1470_p8 = por %p66_p3, %p65_p2  ;;  %p1476_p9 = por %p72_p0, %p71_p5 }
  0x30   : > { %s1755_s21 = smov (%p51_p7, %s1753_s21), 0  ;;  %p82_p12 = scmp.eq.s32.totalorder %s81_s2, 0 }
  0x31   : > { %1718 = sst [smem:[#allocation27_spill]] %s1755_s21  ;;  %s84_s27 = sadd.s32 1, %s1265_s26 }
  0x32   : > { %s53_s24 = ssub.s32 %s1293_s9, %s1755_s21  ;;  %p91_p13 = scmp.ne.s32.totalorder %s1265_s26, %s1261_s25 }
  0x33   : > { %p56_p1 = scmp.eq.s32.totalorder %s53_s24, 0  ;;  %s161_s17 = sor.u32 %s81_s2, %s53_s24 }
  0x34   : > { %s1488_s18 = scalar_select %p82_p12, %s1265_s26, %s84_s27  }
  0x35   : > { %s1491_s3 = scalar_select %p56_p1, %s1277_s29, %s58_s12  }
  0x36   : > { %1719 = sst [smem:[#allocation28_spill]] %s1488_s18  ;;  %p1495_p2 = por %p91_p13, %p66_p3 }
  0x37   : > { %1720 = sst [smem:[#allocation29_spill]] %s1491_s3  ;;  %p164_p5 = scmp.eq.s32.totalorder %s161_s17, 0 }
  0x38   : > { %s166_s6 = sadd.s32 1, %s1253_s23  ;;  %p833_p7 = scmp.lt.s32.totalorder %s1297_s10, 8 }
  0x39   : > { %s1502_s21 = scalar_select %p164_p5, %s1253_s23, %s166_s6  }
  0x3a   : > { %s291_s5 = sand.u32 1, %s1277_s29   ;;  %s760_s2 = sshll.u32 %s1293_s9, 2 }
  0x3b   : > { %1722 = sst [smem:[#allocation30_spill]] %s1502_s21  ;;  %s759_s27 = sshll.u32 %s291_s5, 2 }
  0x3c   : > { %s1723_s0 = sld [smem:[#allocation31_spill]]  ;;  %s295_s4 = scalar_lea.vmem [#allocation2], %s759_s27 }
  0x3d   : > { %s304_s14 = sshll.u32 %s295_s4, 4  ;;  %p815_p3 = pnand %p833_p7, %p1470_p8  ;;  %s305_s14 = int_to_ptr.vmem [resolvable:$true] %s304_s14 }
  0x3e   : > { %p1513_p12 = pnand %p833_p7, %p1495_p2  ;;  %s311_s6 = sand.u32 1, %s1297_s10  }
  0x3f   : > { %s313_s9 = sand.u32 1, %s1265_s26   ;;  %s292_s29 = scalar_lea.sflag [#allocation3], %s291_s5 }
  0x40   : > { %s786_s21 = smul.u32 12, %s313_s9  ;;  %s312_s20 = scalar_lea.sflag [#allocation6], %s311_s6 }
  0x41   : > { %s787_s24 = smul.u32 12, %s1289_s8  ;;  %s1302_s23 = smov 4  }
  0x42   : > { %s300_s3 = scalar_lea.hbm %s1723_s0, %s760_s2  ;;  %s315_s27 = scalar_lea.vmem [#allocation5], %s786_s21 }
  0x43   : > { %s302_s18 = sshll.u32 %s300_s3, 4  ;;  %s320_s4 = scalar_lea.hbm %s1678_s1, %s787_s24  ;;  %s303_s18 = int_to_ptr.hbm [resolvable:$true] %s302_s18 }
  0x44   : > { %817 = dma.hbm_to_vmem [thread:$0]  (!%p815_p3), %s303_s18, 64, %s305_s14, %s292_s29  }
  0x45   : > { %s323_s12 = sshll.u32 %s315_s27, 4  ;;  %s321_s15 = sshll.u32 %s320_s4, 4  ;;  %s324_s12 = int_to_ptr.vmem [resolvable:$true] %s323_s12  ;;  %s322_s15 = int_to_ptr.hbm [resolvable:$true] %s321_s15 }
  0x46   : > { %s1301_s0 = smov 64   ;;  %335 = sbr.rel (%p1441_p11) target bundleno = 583 (0x247), region = 36 }
  0x47   : > { %820 = dma.hbm_to_vmem [thread:$0]  (!%p1513_p12), %s322_s15, 192, %s324_s12, %s312_s20, %s1301_s0, %s1301_s0, %s1302_s23  }
  0x48   : > { %s337_s5 = sand.u32 (!%p1441_p11), 1, %s1273_s28  }
  0x49   : > { %s763_s29 = sshll.u32 (!%p1441_p11), %s337_s5, 2  ;;  %s338_s9 = scalar_lea.sflag (!%p1441_p11), [#allocation3], %s337_s5 }
  0x4a   : > { %s341_s14 = scalar_lea.vmem (!%p1441_p11), [#allocation2], %s763_s29 }
  0x4b   : > { %1220 = dma.done.wait (%p1476_p9), %s338_s9, 64  }
  0x4c   : > { %1222 = vsyncadd (%p1476_p9), %s338_s9, 4294967232  ;;  %s347_s21 = sand.u32 1, %s1413_s11   ;;  %s349_s0 = sand.u32 1, %s1261_s25  }
  0x4d   : > { %s788_s23 = smul.u32 12, %s349_s0  ;;  %s348_s16 = scalar_lea.sflag [#allocation6], %s347_s21 }
  0x4f   : > { %s351_s18 = scalar_lea.vmem [#allocation5], %s788_s23 }
  0x50   : > { %1224 = dma.done.wait (%p1423_p4), %s348_s16, 192  }
  0x51   : > { %1226 = vsyncadd (%p1423_p4), %s348_s16, 4294967104 }
  0x52   : > { %1228 = dma.done.wait (%p72_p0), [#allocation6], 128  }
  0x53   : > { %1230 = vsyncadd (%p72_p0), [#allocation6], 4294967168 }
  0x54   : > { %1232 = dma.done.wait (%p72_p0), [#allocation9], 128  }
  0x55   : > { %1234 = vsyncadd (%p72_p0), [#allocation9], 4294967168  ;;  %v410_v0 = vld [vmem:[%s351_s18 + $0x8] sm:$0xf]  ;;  %v442_v2 = vld [vmem:[#allocation7] sm:$0xff]  ;;  %vm419_vm0 = vcmask 261120  }
  0x56   : > { %v416_v1 = vunpack.c.l.b16 %v410_v0  ;;  %s1303_s19 = smov 8   ;;  %v785_v5 = vld [vmem:[%s351_s18] sm:$0xff]  ;;  %v407_v7 = vld [vmem:[%s341_s14] sm:$0xf]  ;;  %s1304_s13 = smov 4   ;;  %vm451_vm1 = vcmask 31744  }
  0x57   : > { %465 = vrot.lane.b32.xlu1 %v442_v2, %s1303_s19  ;;  %v424_v6 = vsel %vm419_vm0, %v785_v5, 0  ;;  %s1305_s17 = smov 124   ;;  %s1306_s6 = smov 116   ;;  %v443_v11 = vld [vmem:[#allocation8] sm:$0xff]  ;;  %vm458_vm2 = vcmask 60416  }
  0x58   : > { %v418_v3 = vpack.c.b16 %v416_v1, %v416_v1  ;;  %s1307_s24 = smov 112   ;;  %s389_s2 = sand.u32 1, %s1249_s22  }
  0x59   : > { %s1550_s3 = sshll.u32 %s389_s2, 2  ;;  %s777_s15 = sshll.u32 %s1285_s7, 2 }
  0x5a   : > { %v427_v4 = vsel %vm419_vm0, %v418_v3, 0  ;;  %s391_s4 = scalar_lea.vmem [#allocation10], %s1550_s3  ;;  %s405_s12 = scalar_lea.vmem [#allocation13], %s1550_s3 }
  0x5b   : > { %435 = vmatpush.bf16.xpose.msra.mxu0 %v427_v4  ;;  %s509_s20 = sadd.s32 %s1281_s30, %s777_s15  ;;  %s1726_s14 = sld [smem:[#allocation34_spill]] }
  0x5c   : > { %s1561_s5 = sshll.u32 %s509_s20, 2  ;;  %s513_s23 = sshll.u32 %s391_s4, 4  ;;  %s514_s23 = int_to_ptr.vmem [resolvable:$true] %s513_s23 }
  0x5d   : > { %s488_s18 = scalar_lea.sflag [#allocation4], %s389_s2 }
  0x61   : > { %s511_s0 = scalar_lea.hbm %s1726_s14, %s1561_s5 }
  0x62   : > { %s515_s16 = sshll.u32 %s511_s0, 4  ;;  %s516_s16 = int_to_ptr.hbm [resolvable:$true] %s515_s16 }
  0x63   : > { %436 = vmatpush.bf16.xpose.msra.mxu0 %v424_v6 }
  0x6a   : > { %773 = vmatmul.msk.bf16.vlgmr.msra.gmra.mxu0 %vm419_vm0, %v407_v7 }
  0xe7   : > { %v438_v8 = vpop.f32.mrf.mxu0 }
  0xe8   : > { %448 = vrot.lane.b32.xlu2 %v438_v8, %s1304_s13  ;;  %445 = vrot.lane.b32.xlu0 %v438_v8, %s1305_s17  ;;  %v481_v10 = vpack.c.bf16 %v438_v8, %v438_v8  ;;  %v453_v15 = vmul.f32 %v442_v2, %v438_v8  ;;  %s1099_s17 = scalar_lea.hbm %s1726_s14, 32 }
  0xef   : > { %v440_v9 = vpop.f32.mrf.mxu0 }
  0xf0   : > { %460 = vrot.lane.b32.xlu0 %v438_v8, %s1306_s6 }
  0xf8   : > { %483 = vrot.lane.b32.xlu0 %v481_v10, %s1307_s24 }
 0x142   : > { %v449_v12 = vpop.permute.xlu2 %448 }
 0x15a   : > { %v446_v13 = vpop.permute.xlu0 %445 }
 0x15b   : > { %v452_v14 = vsel %vm451_vm1, %v446_v13, %v449_v12 }
 0x15c   : > { %v454_v16 = vmul.f32 %v452_v14, %v443_v11 }
 0x15e   : > { %v455_v17 = vadd.f32 %v454_v16, %v453_v15 }
 0x160   : > { %v456_v18 = vmul.f32 0.35355338, %v455_v17 }
 0x162   : > { %v457_v19 = vpack.c.bf16 %v456_v18, %v456_v18  ;;  %v461_v20 = vpop.permute.xlu0 %460 }
 0x163   : > { %v463_v21 = vsel %vm451_vm1, %v461_v20, %v446_v13 }
 0x164   : > { %v469_v22 = vmul.f32 %v463_v21, %v443_v11  ;;  %459 = vst.msk [vmem:[%s391_s4] sm:$0xf] %vm458_vm2, %v457_v19 }
 0x166   : > { %471 = vrot.lane.b32.xlu1 %v469_v22, %s1303_s19  ;;  %s1093_s19 = sshra.s32 %s516_s16, 4  ;;  %s1094_s19 = int_to_ptr.hbm [resolvable:$true] %s1093_s19 }
 0x167   : > { %s1095_s13 = scalar_lea.hbm %s1094_s19, 4  ;;  %p1100_p8 = scmp.lt.s32.totalorder %s1094_s19, %s1726_s14 }
 0x168   : > { %p1096_p0 = scmp.ne.s32.totalorder %s1094_s19, %s1095_s13  ;;  %p1101_p9 = scmp.lt.s32.totalorder %s1099_s17, %s1095_s13 }
 0x16a   : > { %v484_v23 = vpop.permute.xlu0 %483  ;;  %p1097_p4 = pnand %p1096_p0, %p1429_p6  ;;  %p1102_p13 = por %p1101_p9, %p1100_p8 }
 0x16b   : > { %486 = vst.msk [vmem:[%s405_s12] sm:$0xf] %vm458_vm2, %v484_v23 }
 0x16c   : > { %p1098_p11 = pneg %p1097_p4 }
 0x16e   : > { %p1103_p1 = pnand %p1102_p13, %p1098_p11 }
 0x170   : > { %1106 = shalt.err (!%p1103_p1)
}
 0x171   : > { %801 = dma.vmem_to_hbm [thread:$0]  (%p1429_p6), %s514_s23, 64, %s516_s16, %s488_s18   ;;  %v466_v24 = vpop.permute.xlu1 %465 }
 0x172   : > { %v468_v25 = vmul.f32 %v466_v24, %v438_v8  ;;  %s1308_s2 = smov 120   ;;  %s1727_s20 = sld [smem:[#allocation35_spill]] }
 0x173   : > { %s1728_s19 = sld [smem:[#allocation36_spill]]  ;;  %s398_s30 = scalar_lea.vmem [#allocation11], %s1550_s3 }
 0x174   : > { %s530_s7 = sshll.u32 %s398_s30, 4  ;;  %s1588_s16 = sshll.u32 %s405_s12, 4  ;;  %s531_s7 = int_to_ptr.vmem [resolvable:$true] %s530_s7  ;;  %s548_s16 = int_to_ptr.vmem [resolvable:$true] %s1588_s16 }
 0x178   : > { %s528_s29 = scalar_lea.hbm %s1727_s20, %s1561_s5  ;;  %s1127_s24 = scalar_lea.hbm %s1727_s20, 32 }
 0x179   : > { %s545_s13 = scalar_lea.hbm %s1728_s19, %s1561_s5  ;;  %s532_s23 = sshll.u32 %s528_s29, 4  ;;  %s533_s23 = int_to_ptr.hbm [resolvable:$true] %s532_s23 }
 0x17a   : > { %s1590_s18 = sshll.u32 %s545_s13, 4  ;;  %s493_s5 = scalar_lea.sflag [#allocation12], %s347_s21  ;;  %s550_s18 = int_to_ptr.hbm [resolvable:$true] %s1590_s18 }
 0x17b   : > { %s1121_s17 = sshra.s32 %s533_s23, 4  ;;  %s1122_s17 = int_to_ptr.hbm [resolvable:$true] %s1121_s17 }
 0x17c   : > { %s1123_s6 = scalar_lea.hbm %s1122_s17, 4  ;;  %p1128_p3 = scmp.lt.s32.totalorder %s1122_s17, %s1727_s20 }
 0x17d   : > { %p1124_p2 = scmp.ne.s32.totalorder %s1122_s17, %s1123_s6  ;;  %p1129_p12 = scmp.lt.s32.totalorder %s1127_s24, %s1123_s6 }
 0x17f   : > { %p1125_p5 = pnand %p1124_p2, %p1429_p6  ;;  %p1130_p0 = por %p1129_p12, %p1128_p3 }
 0x181   : > { %p1126_p7 = pneg %p1125_p5 }
 0x183   : > { %p1131_p4 = pnand %p1130_p0, %p1126_p7 }
 0x1d8   : > { %v472_v26 = vpop.permute.xlu1 %471 }
 0x1d9   : > { %v474_v27 = vadd.f32 %v472_v26, %v468_v25 }
 0x1db   : > { %v475_v28 = vpack.c.bf16 %v474_v27, %v474_v27 }
 0x1dd   : > { %477 = vrot.lane.b32.xlu2 %v475_v28, %s1308_s2 }
 0x237   : > { %v478_v29 = vpop.permute.xlu2 %477 }
 0x238   : > { %480 = vst.msk [vmem:[%s398_s30] sm:$0xf] %vm458_vm2, %v478_v29 }
 0x239   : > { %1134 = shalt.err (!%p1131_p4)
}
 0x23a   : > { %802 = dma.vmem_to_hbm [thread:$0]  (%p1429_p6), %s531_s7, 64, %s533_s23, %s493_s5  }
 0x23b   : > { %s1149_s11 = sshra.s32 %s550_s18, 4  ;;  %s1155_s9 = scalar_lea.hbm %s1728_s19, 32  ;;  %s1150_s11 = int_to_ptr.hbm [resolvable:$true] %s1149_s11 }
 0x23c   : > { %s1151_s21 = scalar_lea.hbm %s1150_s11, 4  ;;  %p1156_p13 = scmp.lt.s32.totalorder %s1150_s11, %s1728_s19 }
 0x23d   : > { %p1152_p11 = scmp.ne.s32.totalorder %s1150_s11, %s1151_s21  ;;  %p1157_p1 = scmp.lt.s32.totalorder %s1155_s9, %s1151_s21 }
 0x23f   : > { %p1153_p8 = pnand %p1152_p11, %p1429_p6  ;;  %p1158_p2 = por %p1157_p1, %p1156_p13 }
 0x241   : > { %p1154_p9 = pneg %p1153_p8 }
 0x243   : > { %p1159_p5 = pnand %p1158_p2, %p1154_p9 }
 0x245   : > { %1162 = shalt.err (!%p1159_p5)
}
 0x246   : > { %803 = dma.vmem_to_hbm [thread:$0]  (%p1429_p6), %s548_s16, 64, %s550_s18, %s493_s5  }
 0x247 PF: > { %s1729_s30 = sld [smem:[#allocation20_spill]]  ;;  %p836_p7 = scmp.ge.s32.totalorder %s1297_s10, 2 }
 0x249   : > { %p822_p3 = pnand %p836_p7, %p1437_p10 }
 0x24b   : > { %p823_p12 = pneg %p822_p3 }
 0x24d   : > { %s561_s23 = sand.u32 1, %s1729_s30  }
 0x24e   : > { %s562_s17 = scalar_lea.sflag [#allocation4], %s561_s23 }
 0x24f   : > { %1236 = dma.done.wait (%p823_p12), %s562_s17, 64  }
 0x250   : > { %1238 = vsyncadd (%p823_p12), %s562_s17, 4294967232  ;;  %s1731_s6 = sadd.s32 4294967294, %s1297_s10  }
 0x251   : > { %s571_s27 = sand.u32 1, %s1731_s6  }
 0x252   : > { %s572_s3 = scalar_lea.sflag [#allocation12], %s571_s27 }
 0x253   : > { %1240 = dma.done.wait (%p823_p12), %s572_s3, 128  }
 0x254   : > { %1242 = vsyncadd (%p823_p12), %s572_s3, 4294967168  ;;  %s30_s10 = sadd.s32 1, %s1297_s10   ;;  %s1733_s18 = sld [smem:[#allocation21_spill]] }
 0x255   : > { %p1630_p6 = scmp.ge.s32.totalorder %s30_s10, 10   ;;  %s1734_s23 = sld [smem:[#allocation30_spill]] }
 0x256   : > { %s1735_s5 = sld [smem:[#allocation28_spill]]  ;;  %s1741_s21 = smov %s1249_s22 }
 0x257   : > { %s1736_s12 = sld [smem:[#allocation22_spill]]  ;;  %s1743_s24 = smov %s1261_s25 }
 0x258   : > { %s1737_s29 = sld [smem:[#allocation29_spill]]  ;;  %s1744_s25 = smov %s1265_s26 }
 0x259   : > { %s1738_s7 = sld [smem:[#allocation23_spill]]  ;;  %s1746_s27 = smov %s1273_s28 }
 0x25a   : > { %s1739_s2 = sld [smem:[#allocation26_spill]]  ;;  %s1742_s22 = smov %s1733_s18 }
 0x25b   : > { %s1740_s9 = sld [smem:[#allocation27_spill]]  ;;  %s1748_s30 = smov %s1289_s8 }
 0x25c   : > { %s1745_s26 = smov %s1735_s5  ;;  %29 = sbr.rel (!%p1630_p6) target bundleno = 22 (0x16), region = 136 }
 0x25d   : > { %s1747_s28 = smov %s1736_s12 }
 0x260   : > { %s1749_s8 = smov %s1739_s2 }
 0x261   :  { %588 = vsyncpa [#allocation3], 1 }
 0x262   :  { %590 = vsyncpa [#allocation3 + $0x1], 1 }
 0x263   :  { %591 = vsyncpa [#allocation6], 1 }
 0x264   :  { %593 = vsyncpa [#allocation6 + $0x1], 1 }
 0x265   :  { %594 = vsyncpa [#allocation9], 1 }
 0x266   :  { %595 = vsyncpa [#allocation4], 1 }
 0x267   :  { %597 = vsyncpa [#allocation4 + $0x1], 1 }
 0x268   :  { %598 = vsyncpa [#allocation12], 1 }
 0x269   :  { %600 = vsyncpa [#allocation12 + $0x1], 1 }

</bundles_post_ra>
